<compile_context>
chip_gen: v6e
topology: v6e:2x2x1
jax: 0.10.0
libtpu: 0.0.40
codegen_flags: <defaults>
</compile_context>

<pallas_src>
import jax
import jax.numpy as jnp
from jax.experimental import pallas as pl
from jax.experimental.pallas import tpu as pltpu


# ---------------------------------------------------------------------------
# Kernel: local-attention branch + sigmoid gating + weighted fusion.
# Block layout is (1, C, tile_hw): sublane dim = C (multiple of 8),
# lane dim = tile_hw (multiple of 128 or full HW) -> lane-dense vregs/stores.
# ---------------------------------------------------------------------------
def aff_kernel(x_ref, r_ref, xg_ref,
               w1_ref, b1_ref, w2_ref, b2_ref,
               o_ref):
    x = x_ref[0].astype(jnp.float32)       # (C, tHW)
    res = r_ref[0].astype(jnp.float32)     # (C, tHW)
    xa = x + res

    # local attention: 1x1 conv (+folded BN) -> ReLU -> 1x1 conv (+folded BN)
    h = jnp.dot(w1_ref[...], xa, preferred_element_type=jnp.float32) + b1_ref[...]
    h = jnp.maximum(h, 0.0)                # (Ci, tHW)
    xl = jnp.dot(w2_ref[...], h, preferred_element_type=jnp.float32) + b2_ref[...]  # (C, tHW)

    # hoisted global-attention logits (C, 1) broadcast along HW
    wei = jax.nn.sigmoid(xl + xg_ref[0])

    # 2*x*wei + 2*res*(1-wei)  ==  2*(res + wei*(x - res))
    o_ref[0] = (2.0 * (res + wei * (x - res))).astype(o_ref.dtype)


# ---------------------------------------------------------------------------
# Parameter folding / helpers
# ---------------------------------------------------------------------------
def fold_conv_bn(conv_w, conv_b, gamma, beta, mean, var, eps=1e-5):
    """Fold 1x1 conv (Cout, Cin, 1, 1) + eval-mode BN -> W (Cout, Cin), b (Cout, 1)."""
    w = conv_w[:, :, 0, 0]                       # (Cout, Cin)
    s = gamma / jnp.sqrt(var + eps)              # (Cout,)
    w_f = w * s[:, None]                         # (Cout, Cin)
    b_f = (conv_b - mean) * s + beta             # (Cout,)
    return w_f.astype(jnp.float32), b_f.reshape(-1, 1).astype(jnp.float32)


def _pick_tile_hw(hw, max_tile=2048):
    """Largest HW tile (<= max_tile, multiple of 128) dividing HW, else full HW."""
    if hw % 128 != 0:
        return hw
    t = max_tile
    while t >= 128:
        if hw % t == 0:
            return t
        t //= 2
    return hw


# ---------------------------------------------------------------------------
# Forward wrapper (NCHW in / NCHW out)
# ---------------------------------------------------------------------------
def aff_forward(x_nchw, res_nchw, params, *, tile_hw=None):
    B, C, H, W = x_nchw.shape
    HW = H * W
    w1, b1, w2, b2, w1g, b1g, w2g, b2g = params
    Ci = w1.shape[0]
    io_dtype = x_nchw.dtype

    # NCHW-native: pure reshape, no transpose passes over HBM.
    x = x_nchw.reshape(B, C, HW)
    r = res_nchw.reshape(B, C, HW)

    # ---- global-attention branch hoisted out of the kernel (M=1 matmuls) ----
    pooled = (jnp.mean(x.astype(jnp.float32), axis=-1)
              + jnp.mean(r.astype(jnp.float32), axis=-1))               # (B, C)
    hg = jnp.maximum(pooled @ w1g.T + b1g[:, 0], 0.0)                   # (B, Ci)
    xg = (hg @ w2g.T + b2g[:, 0])[:, :, None].astype(jnp.float32)       # (B, C, 1)

    if tile_hw is None:
        tile_hw = _pick_tile_hw(HW)
    if HW % tile_hw != 0:
        raise ValueError(f"tile_hw={tile_hw} must divide H*W={HW}")
    nt = HW // tile_hw

    grid_spec = pltpu.PrefetchScalarGridSpec(
        num_scalar_prefetch=0,
        grid=(B, nt),
        in_specs=[
            pl.BlockSpec((1, C, tile_hw), lambda b, t: (b, 0, t)),   # x
            pl.BlockSpec((1, C, tile_hw), lambda b, t: (b, 0, t)),   # residual
            pl.BlockSpec((1, C, 1), lambda b, t: (b, 0, 0)),         # hoisted global logits
            pl.BlockSpec((Ci, C), lambda b, t: (0, 0)),              # local W1 (conv+BN folded)
            pl.BlockSpec((Ci, 1), lambda b, t: (0, 0)),              # local b1
            pl.BlockSpec((C, Ci), lambda b, t: (0, 0)),              # local W2
            pl.BlockSpec((C, 1), lambda b, t: (0, 0)),               # local b2
        ],
        out_specs=pl.BlockSpec((1, C, tile_hw), lambda b, t: (b, 0, t)),
    )

    out = pl.pallas_call(
        aff_kernel,
        out_shape=jax.ShapeDtypeStruct((B, C, HW), io_dtype),
        grid_spec=grid_spec,
        compiler_params=pltpu.CompilerParams(
            # both grid axes are independent -> shard across v7x's 2 TensorCores
            dimension_semantics=("parallel", "parallel"),
            # small double-buffered tiles; stays well inside v7x's 64 MiB VMEM
            vmem_limit_bytes=32 * 1024 * 1024,
        ),
    )(x, r, xg, w1, b1, w2, b2)

    return out.reshape(B, C, H, W)


# ---------------------------------------------------------------------------
# Pure-JAX reference (NCHW in/out, f32 math) with identical folded params.
# ---------------------------------------------------------------------------
def aff_reference(x, res, params):
    w1, b1, w2, b2, w1g, b1g, w2g, b2g = params
    B, C, H, W = x.shape
    x = x.astype(jnp.float32)
    res = res.astype(jnp.float32)
    xa = (x + res).reshape(B, C, H * W)
    xl = jnp.maximum(jnp.einsum('oc,bcn->bon', w1, xa) + b1[None], 0.0)
    xl = jnp.einsum('oc,bcn->bon', w2, xl) + b2[None]
    pooled = jnp.mean(xa, axis=-1)                                      # (B, C)
    hg = jnp.maximum(pooled @ w1g.T + b1g[:, 0], 0.0)
    xg = (hg @ w2g.T + b2g[:, 0])[:, :, None]
    wei = jax.nn.sigmoid(xl + xg)
    x_f = x.reshape(B, C, H * W)
    r_f = res.reshape(B, C, H * W)
    o = 2.0 * x_f * wei + 2.0 * r_f * (1.0 - wei)
    return o.reshape(B, C, H, W)


def make_params(key, channels=64, r=4):
    """Deterministic synthetic conv weights/biases + eval-mode BN stats, folded."""
    ci = channels // r
    ks = jax.random.split(key, 24)

    def conv_bn(kw, kb, kg, kbeta, km, kv, cin, cout):
        cw = 0.1 * jax.random.normal(kw, (cout, cin, 1, 1), jnp.float32)
        cb = 0.05 * jax.random.normal(kb, (cout,), jnp.float32)
        gamma = 1.0 + 0.1 * jax.random.normal(kg, (cout,), jnp.float32)
        beta = 0.05 * jax.random.normal(kbeta, (cout,), jnp.float32)
        mean = 0.02 * jax.random.normal(km, (cout,), jnp.float32)
        var = jnp.abs(0.5 + 0.1 * jax.random.normal(kv, (cout,), jnp.float32))
        return fold_conv_bn(cw, cb, gamma, beta, mean, var)

    w1, b1 = conv_bn(*ks[0:6], channels, ci)      # local branch
    w2, b2 = conv_bn(*ks[6:12], ci, channels)
    w1g, b1g = conv_bn(*ks[12:18], channels, ci)  # global branch
    w2g, b2g = conv_bn(*ks[18:24], ci, channels)
    return (w1, b1, w2, b2, w1g, b1g, w2g, b2g)


if __name__ == "__main__":
    # NOTE: BatchNorm uses eval-mode (running-stats) semantics, folded into the 1x1 convs.
    key = jax.random.PRNGKey(0)
    k_x, k_r, k_p = jax.random.split(key, 3)

    B, C, H, W = 2, 64, 16, 16          # channels=64, r=4 -> inter_channels=16
    x = jax.random.normal(k_x, (B, C, H, W), jnp.float32)
    residual = jax.random.normal(k_r, (B, C, H, W), jnp.float32)
    params = make_params(k_p, channels=C, r=4)

    # --- f32 I/O path; tile_hw=128 exercises spatial tiling (grid = (2, 2)) ---
    ref = aff_reference(x, residual, params)
    out_f32 = jax.block_until_ready(aff_forward(x, residual, params, tile_hw=128))
    assert out_f32.shape == (B, C, H, W)
    assert jnp.allclose(out_f32, ref, atol=1e-4, rtol=1e-4), "f32 mismatch vs reference"

    # --- bf16 I/O path (HBM-bound deployment config; compute stays f32) ---
    x_b = x.astype(jnp.bfloat16)
    r_b = residual.astype(jnp.bfloat16)
    ref_b = aff_reference(x_b, r_b, params)       # same quantized inputs, f32 math
    out_b = jax.block_until_ready(aff_forward(x_b, r_b, params))
    assert out_b.dtype == jnp.bfloat16
    assert jnp.allclose(out_b.astype(jnp.float32), ref_b, atol=2e-2, rtol=2e-2), \
        "bf16 mismatch vs reference"

    print("KERNEL_OK")
</pallas_src>

<mosaic_0001>
module attributes {stable_mosaic.version = 11 : i64} {
  func.func @aff_kernel(%arg0: i32, %arg1: i32, %arg2: memref<1x64x128xf32, #tpu.memory_space<vmem>>, %arg3: memref<1x64x128xf32, #tpu.memory_space<vmem>>, %arg4: memref<1x64x1xf32, #tpu.memory_space<vmem>>, %arg5: memref<16x64xf32, #tpu.memory_space<vmem>>, %arg6: memref<16x1xf32, #tpu.memory_space<vmem>>, %arg7: memref<64x16xf32, #tpu.memory_space<vmem>>, %arg8: memref<64x1xf32, #tpu.memory_space<vmem>>, %arg9: memref<1x64x128xf32, #tpu.memory_space<vmem>>) attributes {dimension_semantics = [#tpu.dimension_semantics<parallel>, #tpu.dimension_semantics<parallel>], iteration_bounds = array<i64: 2, 2>, scalar_prefetch = 0 : i64, scratch_operands = 0 : i64, tpu.core_type = #tpu.core_type<tc>, window_params = [{transform_indices = @transform_0, window_bounds = array<i64: 1, 64, 128>}, {transform_indices = @transform_1, window_bounds = array<i64: 1, 64, 128>}, {transform_indices = @transform_2, window_bounds = array<i64: 1, 64, 1>}, {pipeline_mode = #tpu.pipeline_mode<synchronous>, transform_indices = @transform_3, window_bounds = array<i64: 16, 64>}, {pipeline_mode = #tpu.pipeline_mode<synchronous>, transform_indices = @transform_4, window_bounds = array<i64: 16, 1>}, {pipeline_mode = #tpu.pipeline_mode<synchronous>, transform_indices = @transform_5, window_bounds = array<i64: 64, 16>}, {pipeline_mode = #tpu.pipeline_mode<synchronous>, transform_indices = @transform_6, window_bounds = array<i64: 64, 1>}, {transform_indices = @transform_7, window_bounds = array<i64: 1, 64, 128>}]} {
    %c0 = arith.constant 0 : index
    %c0_0 = arith.constant 0 : index
    %c0_1 = arith.constant 0 : index
    %0 = vector.load %arg2[%c0, %c0_0, %c0_1] : memref<1x64x128xf32, #tpu.memory_space<vmem>>, vector<1x64x128xf32>
    %1 = vector.shape_cast %0 : vector<1x64x128xf32> to vector<64x128xf32>
    %c0_2 = arith.constant 0 : index
    %c0_3 = arith.constant 0 : index
    %c0_4 = arith.constant 0 : index
    %2 = vector.load %arg3[%c0_2, %c0_3, %c0_4] : memref<1x64x128xf32, #tpu.memory_space<vmem>>, vector<1x64x128xf32>
    %3 = vector.shape_cast %2 : vector<1x64x128xf32> to vector<64x128xf32>
    %4 = arith.addf %1, %3 : vector<64x128xf32>
    %c0_5 = arith.constant 0 : index
    %c0_6 = arith.constant 0 : index
    %5 = vector.load %arg5[%c0_5, %c0_6] : memref<16x64xf32, #tpu.memory_space<vmem>>, vector<16x64xf32>
    %cst = arith.constant dense<0.000000e+00> : vector<16x128xf32>
    %6 = tpu.matmul %5, %4, %cst {dimension_numbers = #tpu.dot_dimension_numbers<[1], [0], [0], [1], [0, 0, 1, 1], [], []>} : vector<16x64xf32>, vector<64x128xf32>, vector<16x128xf32> -> vector<16x128xf32>
    %c0_7 = arith.constant 0 : index
    %c0_8 = arith.constant 0 : index
    %7 = vector.load %arg6[%c0_7, %c0_8] : memref<16x1xf32, #tpu.memory_space<vmem>>, vector<16x1xf32>
    %8 = vector.broadcast %7 : vector<16x1xf32> to vector<16x128xf32>
    %9 = arith.addf %6, %8 : vector<16x128xf32>
    %cst_9 = arith.constant 0.000000e+00 : f32
    %10 = vector.broadcast %cst_9 : f32 to vector<16x128xf32>
    %11 = arith.maximumf %9, %10 : vector<16x128xf32>
    %c0_10 = arith.constant 0 : index
    %c0_11 = arith.constant 0 : index
    %12 = vector.load %arg7[%c0_10, %c0_11] : memref<64x16xf32, #tpu.memory_space<vmem>>, vector<64x16xf32>
    %cst_12 = arith.constant dense<0.000000e+00> : vector<64x128xf32>
    %13 = tpu.matmul %12, %11, %cst_12 {dimension_numbers = #tpu.dot_dimension_numbers<[1], [0], [0], [1], [0, 0, 1, 1], [], []>} : vector<64x16xf32>, vector<16x128xf32>, vector<64x128xf32> -> vector<64x128xf32>
    %c0_13 = arith.constant 0 : index
    %c0_14 = arith.constant 0 : index
    %14 = vector.load %arg8[%c0_13, %c0_14] : memref<64x1xf32, #tpu.memory_space<vmem>>, vector<64x1xf32>
    %15 = vector.broadcast %14 : vector<64x1xf32> to vector<64x128xf32>
    %16 = arith.addf %13, %15 : vector<64x128xf32>
    %c0_15 = arith.constant 0 : index
    %c0_16 = arith.constant 0 : index
    %c0_17 = arith.constant 0 : index
    %17 = vector.load %arg4[%c0_15, %c0_16, %c0_17] : memref<1x64x1xf32, #tpu.memory_space<vmem>>, vector<1x64x1xf32>
    %18 = vector.shape_cast %17 : vector<1x64x1xf32> to vector<64x1xf32>
    %19 = vector.broadcast %18 : vector<64x1xf32> to vector<64x128xf32>
    %20 = arith.addf %16, %19 : vector<64x128xf32>
    %21 = arith.negf %20 : vector<64x128xf32>
    %22 = math.exp %21 : vector<64x128xf32>
    %cst_18 = arith.constant 1.000000e+00 : f32
    %23 = vector.broadcast %cst_18 : f32 to vector<64x128xf32>
    %24 = arith.addf %23, %22 : vector<64x128xf32>
    %25 = arith.divf %23, %24 : vector<64x128xf32>
    %26 = arith.subf %1, %3 : vector<64x128xf32>
    %27 = arith.mulf %25, %26 : vector<64x128xf32>
    %28 = arith.addf %3, %27 : vector<64x128xf32>
    %cst_19 = arith.constant 2.000000e+00 : f32
    %29 = vector.broadcast %cst_19 : f32 to vector<64x128xf32>
    %30 = arith.mulf %29, %28 : vector<64x128xf32>
    %c0_20 = arith.constant 0 : index
    %c0_21 = arith.constant 0 : index
    %c0_22 = arith.constant 0 : index
    %31 = vector.load %arg9[%c0_20, %c0_21, %c0_22] : memref<1x64x128xf32, #tpu.memory_space<vmem>>, vector<1x64x128xf32>
    %32 = vector.shape_cast %31 : vector<1x64x128xf32> to vector<64x128xf32>
    %33 = vector.shape_cast %30 : vector<64x128xf32> to vector<1x64x128xf32>
    tpu.vector_store %arg9[%c0_20, %c0_21, %c0_22], %33 {strides = array<i32>} : memref<1x64x128xf32, #tpu.memory_space<vmem>>, vector<1x64x128xf32>,
    return
  }
  func.func @transform_0(%arg0: i32, %arg1: i32) -> (i32, i32, i32) {
    %c0_i32 = arith.constant 0 : i32
    %c0_i32_0 = arith.constant 0 : i32
    return %arg0, %c0_i32, %arg1 : i32, i32, i32
  }
  func.func @transform_1(%arg0: i32, %arg1: i32) -> (i32, i32, i32) {
    %c0_i32 = arith.constant 0 : i32
    %c0_i32_0 = arith.constant 0 : i32
    return %arg0, %c0_i32, %arg1 : i32, i32, i32
  }
  func.func @transform_2(%arg0: i32, %arg1: i32) -> (i32, i32, i32) {
    %c0_i32 = arith.constant 0 : i32
    %c0_i32_0 = arith.constant 0 : i32
    %c0_i32_1 = arith.constant 0 : i32
    return %arg0, %c0_i32, %c0_i32_0 : i32, i32, i32
  }
  func.func @transform_3(%arg0: i32, %arg1: i32) -> (i32, i32) {
    %c0_i32 = arith.constant 0 : i32
    %c0_i32_0 = arith.constant 0 : i32
    %c0_i32_1 = arith.constant 0 : i32
    return %c0_i32, %c0_i32_0 : i32, i32
  }
  func.func @transform_4(%arg0: i32, %arg1: i32) -> (i32, i32) {
    %c0_i32 = arith.constant 0 : i32
    %c0_i32_0 = arith.constant 0 : i32
    %c0_i32_1 = arith.constant 0 : i32
    return %c0_i32, %c0_i32_0 : i32, i32
  }
  func.func @transform_5(%arg0: i32, %arg1: i32) -> (i32, i32) {
    %c0_i32 = arith.constant 0 : i32
    %c0_i32_0 = arith.constant 0 : i32
    %c0_i32_1 = arith.constant 0 : i32
    return %c0_i32, %c0_i32_0 : i32, i32
  }
  func.func @transform_6(%arg0: i32, %arg1: i32) -> (i32, i32) {
    %c0_i32 = arith.constant 0 : i32
    %c0_i32_0 = arith.constant 0 : i32
    %c0_i32_1 = arith.constant 0 : i32
    return %c0_i32, %c0_i32_0 : i32, i32
  }
  func.func @transform_7(%arg0: i32, %arg1: i32) -> (i32, i32, i32) {
    %c0_i32 = arith.constant 0 : i32
    %c0_i32_0 = arith.constant 0 : i32
    return %arg0, %c0_i32, %arg1 : i32, i32, i32
  }
}

</mosaic_0001>

<bundles_post_ra>
// kernel: tpu_custom_call.1
= control target key start
LH: loop header
LB: loop body
LE: loop exit
PB: predicated region body
PF: predicated region fallthrough
CT: control target
= control target key end

     0   :  { %s1741_s0 = inlined_call_operand.vmem [shape: f32[2,64,256], index: 0, kind: input, shape index: {}]   ;;  %s1742_s1 = inlined_call_operand.hbm [shape: f32[2,64,256], index: 1, kind: input, shape index: {}]   ;;  %s1743_s2 = inlined_call_operand.vmem [shape: f32[2,64,1], index: 2, kind: input, shape index: {}]   ;;  %s1744_s3 = inlined_call_operand.vmem [shape: f32[16,64], index: 3, kind: input, shape index: {}]   ;;  %s1745_s4 = inlined_call_operand.vmem [shape: f32[16,1], index: 4, kind: input, shape index: {}]   ;;  %s1746_s5 = inlined_call_operand.vmem [shape: f32[64,16], index: 5, kind: input, shape index: {}]   ;;  %s1747_s6 = inlined_call_operand.vmem [shape: f32[64,1], index: 6, kind: input, shape index: {}]   ;;  %s1748_s7 = inlined_call_operand.hbm [shape: f32[2,64,256], index: 7, kind: output, shape index: {}]  }
   0x1   :  { %1754 = sst [smem:[#allocation15_spill]] %s1741_s0 }
   0x2   :  { %12 = vsyncpa [#allocation4], 0 }
   0x3   :  { %14 = vsyncpa [#allocation4 + $0x1], 0 }
   0x4   :  { %15 = vsyncpa [#allocation5], 0 }
   0x5   :  { %17 = vsyncpa [#allocation5 + $0x1], 0  ;;  %s1390_s24 = smov 0   ;;  %s1392_s25 = smov 0  }
   0x6   :  { %s1394_s26 = smov 0   ;;  %s1396_s27 = smov 0  }
   0x7   :  { %s1398_s28 = smov 0   ;;  %s1400_s29 = smov 0  }
   0x8   :  { %s1402_s30 = smov 0   ;;  %s1404_s8 = smov 0  }
   0x9 LB: > { %1755 = sst [smem:[#allocation9_spill]] %s1311_s24  ;;  %s1008_s9 = sadd.s32 4294967295, %s1339_s8   ;;  %s1339_s8 = sphi %s1404_s8, %s23_s8   ;;  %s1335_s30 = sphi %s1402_s30, %s1771_s30   ;;  %s1331_s29 = sphi %s1400_s29, %s1776_s29   ;;  %s1327_s28 = sphi %s1398_s28, %s1769_s28   ;;  %s1323_s27 = sphi %s1396_s27, %s1775_s27   ;;  %s1319_s26 = sphi %s1394_s26, %s1774_s26   ;;  %s1315_s25 = sphi %s1392_s25, %s1773_s25   ;;  %s1311_s24 = sphi %s1390_s24, %s1772_s24  }
   0xa   : > { %1756 = sst [smem:[#allocation10_spill]] %s1335_s30  ;;  %s1009_s10 = sadd.s32 4294967294, %s1339_s8  }
   0xb   : > { %s32_s11 = sadd.s32 1, %s1331_s29  ;;  %s35_s12 = sadd.s32 1, %s1335_s30 }
   0xc   : > { %p33_p0 = scmp.ge.s32.totalorder %s32_s11, 2  ;;  %p51_p1 = scmp.ne.s32.totalorder %s1319_s26, %s1315_s25 }
   0xd   : > { %p52_p2 = scmp.eq.s32.totalorder %s1339_s8, 0  ;;  %p85_p5 = scmp.ne.s32.totalorder %s1315_s25, %s1311_s24 }
   0xe   : > { %s1778_s11 = smov (%p33_p0, %s32_s11), 0  ;;  %s1780_s12 = smov (!%p33_p0, %s35_s12), %s1335_s30 }
   0xf   : > { %1757 = sst [smem:[#allocation11_spill]] %s1778_s11  ;;  %s40_s13 = ssub.s32 %s1331_s29, %s1778_s11 }
  0x10   : > { %p1442_p3 = por %p52_p2, %p51_p1  ;;  %p37_p4 = scmp.ge.s32.totalorder %s1780_s12, 2 }
  0x11   : > { %p86_p6 = scmp.eq.s32.totalorder %s1008_s9, 0  ;;  %p221_p7 = scmp.eq.s32.totalorder %s1008_s9, 3 }
  0x12   : > { %s1782_s12 = smov (%p37_p4, %s1780_s12), 0  ;;  %p227_p10 = scmp.eq.s32.totalorder %s1009_s10, 3 }
  0x13   : > { %1759 = sst [smem:[#allocation12_spill]] %s1782_s12  ;;  %p1450_p8 = por %p86_p6, %p85_p5 }
  0x14   : > { %p1454_p9 = por %p221_p7, %p51_p1  ;;  %s39_s17 = ssub.s32 %s1335_s30, %s1782_s12 }
  0x15   : > { %s41_s18 = sor.u32 %s40_s13, %s39_s17  ;;  %s44_s19 = sadd.s32 1, %s1319_s26 }
  0x16   : > { %p42_p11 = scmp.eq.s32.totalorder %s41_s18, 0  ;;  %p1461_p12 = por %p227_p10, %p85_p5 }
  0x17   : > { %p1011_p13 = scmp.ge.s32.totalorder %s1339_s8, 4 }
  0x18   : > { %s1762_s20 = scalar_select %p1461_p12, 1, 0 }
  0x19   : > { %s1466_s21 = scalar_select %p42_p11, %s1319_s26, %s44_s19  }
  0x1a   : > { %1763 = sst [smem:[#allocation13_spill]] %s1762_s20  ;;  %255 = sbr.rel (%p1011_p13) target bundleno = 63 (0x3f), region = 32 }
  0x1b   : > { %1764 = sst [smem:[#allocation14_spill]] %s1466_s21 }
  0x1f   : > { %258 = sbr.rel (!%p1442_p3) target bundleno = 45 (0x2d), region = 36  ;;  %s260_s22 = sand.u32 (%p1442_p3), 1, %s1319_s26  }
  0x20   : > { %s1013_s23 = sshll.u32 (%p1442_p3), %s1335_s30, 4  ;;  %s1012_s9 = sshll.u32 (%p1442_p3), %s260_s22, 6 }
  0x21   : > { %s264_s10 = sadd.s32 (%p1442_p3), %s1331_s29, %s1013_s23  ;;  %s1765_s0 = sld [smem:[#allocation15_spill]] (%p1442_p3) }
  0x22   : > { %s1014_s13 = sshll.u32 (%p1442_p3), %s264_s10, 3  ;;  %s262_s19 = scalar_lea.vmem (%p1442_p3), [#allocation2], %s1012_s9 }
  0x27   : > { %s266_s12 = scalar_lea.vmem %s1765_s0, %s1014_s13 }
  0x28   : > { %v309_v0 = vld [vmem:[%s266_s12] sm:$0xff]  ;;  %v311_v1 = vld [vmem:[%s266_s12 + $0x10] sm:$0xff] }
  0x29   : > { %v313_v2 = vld [vmem:[%s266_s12 + $0x20] sm:$0xff]  ;;  %310 = vst [vmem:[%s262_s19] sm:$0xff] %v309_v0  ;;  %312 = vst [vmem:[%s262_s19 + $0x8] sm:$0xff] %v311_v1  ;;  %v315_v3 = vld [vmem:[%s266_s12 + $0x30] sm:$0xff] }
  0x2a   : > { %314 = vst [vmem:[%s262_s19 + $0x10] sm:$0xff] %v313_v2  ;;  %v317_v4 = vld [vmem:[%s266_s12 + $0x40] sm:$0xff]  ;;  %v319_v5 = vld [vmem:[%s266_s12 + $0x50] sm:$0xff]  ;;  %316 = vst [vmem:[%s262_s19 + $0x18] sm:$0xff] %v315_v3 }
  0x2b   : > { %318 = vst [vmem:[%s262_s19 + $0x20] sm:$0xff] %v317_v4  ;;  %320 = vst [vmem:[%s262_s19 + $0x28] sm:$0xff] %v319_v5  ;;  %v321_v6 = vld [vmem:[%s266_s12 + $0x60] sm:$0xff]  ;;  %v323_v7 = vld [vmem:[%s266_s12 + $0x70] sm:$0xff] }
  0x2c   : > { %322 = vst [vmem:[%s262_s19 + $0x30] sm:$0xff] %v321_v6  ;;  %324 = vst [vmem:[%s262_s19 + $0x38] sm:$0xff] %v323_v7 }
  0x2d PF: > { %s331_s22 = sand.u32 1, %s1319_s26   ;;  %s1016_s23 = sshll.u32 %s1335_s30, 4 }
  0x2e   : > { %s1015_s9 = sshll.u32 %s331_s22, 6  ;;  %s340_s10 = sadd.s32 %s1331_s29, %s1016_s23 }
  0x2f   : > { %s1017_s13 = sshll.u32 %s340_s10, 7  ;;  %s335_s17 = scalar_lea.vmem [#allocation3], %s1015_s9 }
  0x30   : > { %s343_s18 = sshll.u32 %s335_s17, 4  ;;  %s342_s21 = scalar_lea.hbm %s1742_s1, %s1017_s13  ;;  %s344_s18 = int_to_ptr.vmem [resolvable:$true] %s343_s18 }
  0x31   : > { %s332_s12 = scalar_lea.sflag [#allocation4], %s331_s22  ;;  %s1229_s20 = scalar_lea.vmem %s344_s18, 1024 }
  0x32   : > { %p1230_p0 = scmp.ne.s32.totalorder %s344_s18, %s1229_s20  ;;  %s1341_s19 = smov [#allocation3]  }
  0x33   : > { %s1233_s24 = sshll.u32 %s1341_s19, 4  ;;  %s1234_s24 = int_to_ptr.vmem [resolvable:$false] %s1233_s24 }
  0x34   : > { %p1231_p1 = pnand %p1230_p0, %p1442_p3  ;;  %s1235_s30 = scalar_lea.vmem %s1234_s24, 2048 }
  0x35   : > { %p1236_p4 = scmp.lt.s32.totalorder %s344_s18, %s1234_s24  ;;  %p1237_p5 = scmp.lt.s32.totalorder %s1235_s30, %s1229_s20 }
  0x36   : > { %p1232_p2 = pneg %p1231_p1 }
  0x37   : > { %p1238_p6 = por %p1237_p5, %p1236_p4 }
  0x39   : > { %p1239_p7 = pnand %p1238_p6, %p1232_p2 }
  0x3b   : > { %1242 = shalt.err (!%p1239_p7)
}
  0x3c   : > { %s1342_s23 = smov 256   ;;  %s1343_s0 = smov 128  }
  0x3d   : > { %s1344_s11 = smov 8  }
  0x3e   : > { %1103 = dma.hbm_to_vmem [thread:$0]  (%p1442_p3), %s342_s21, 1024, %s344_s18, %s332_s12, %s1342_s23, %s1343_s0, %s1344_s11  }
  0x3f PF: > { %p1018_p10 = scmp.ge.s32.totalorder %s1339_s8, 1  ;;  %p359_p11 = scmp.lt.s32.totalorder %s1339_s8, 5 }
  0x41   : > { %p360_p13 = pnand %p1018_p10, %p359_p11 }
  0x42   : > { %s1490_s24 = sand.u32 (!%p360_p13), 1, %s1315_s25  }
  0x43   : > { %363 = sbr.rel (%p360_p13) target bundleno = 558 (0x22e), region = 82  ;;  %s1493_s30 = sshll.u32 (!%p360_p13), %s1490_s24, 6 }
  0x44   : > { %s1496_s20 = scalar_lea.vmem (!%p360_p13), [#allocation2], %s1493_s30  ;;  %s373_s14 = scalar_lea.sflag (!%p360_p13), [#allocation4], %s1490_s24 }
  0x45   : > { %s1500_s21 = scalar_lea.vmem (!%p360_p13), [#allocation3], %s1493_s30 }
  0x48   : > { %1302 = dma.done.wait (%p1450_p8), %s373_s14, 1024  }
  0x49   : > { %1304 = vsyncadd (%p1450_p8), %s373_s14, 4294966272  ;;  %v1345_v8 = vmov 0   ;;  %v1507_v9 = vld [vmem:[%s1496_s20 + $0x38] sm:$0xff]  ;;  %v1513_v11 = vld [vmem:[%s1496_s20 + $0x30] sm:$0xff]  ;;  %vm459_vm0 = vcmask 523264   ;;  %p416_p3 = scmp.lt.s32.totalorder %s1327_s28, 1 }
  0x4a   : > { %1183 = vset.pattern.permute.xlu0 %v1345_v8  ;;  %1184 = vset.pattern.permute.xlu1 %v1345_v8  ;;  %v1510_v10 = vld [vmem:[%s1500_s21 + $0x38] sm:$0xff]  ;;  %v1518_v13 = vld [vmem:[%s1500_s21 + $0x30] sm:$0xff]  ;;  %v1521_v14 = vld [vmem:[%s1496_s20 + $0x28] sm:$0xff]  ;;  %vm599_vm1 = vcmask 130048   ;;  %s1660_s15 = scalar_lea.vmem [#allocation6], %s1493_s30  ;;  %s1043_s22 = sshll.u32 %s1327_s28, 4 }
  0x4b   : > { %v444_v12 = vadd.f32 %v1510_v10, %v1507_v9  ;;  %v1524_v15 = vld [vmem:[%s1500_s21 + $0x28] sm:$0xff]  ;;  %v443_v16 = vadd.f32 %v1518_v13, %v1513_v11  ;;  %v1529_v17 = vld [vmem:[%s1496_s20 + $0x20] sm:$0xff]  ;;  %v1537_v20 = vld [vmem:[%s1496_s20 + $0x18] sm:$0xff]  ;;  %s417_s19 = scalar_select %p416_p3, %s1327_s28, 1 }
  0x4c   : > { %v1532_v18 = vld [vmem:[%s1500_s21 + $0x20] sm:$0xff]  ;;  %v442_v19 = vadd.f32 %v1524_v15, %v1521_v14  ;;  %v1540_v21 = vld [vmem:[%s1500_s21 + $0x18] sm:$0xff]  ;;  %v1548_v24 = vld [vmem:[%s1496_s20 + $0x10] sm:$0xff]  ;;  %s885_s28 = sadd.s32 %s1323_s27, %s1043_s22  ;;  %s888_s9 = sshll.u32 %s1660_s15, 4  ;;  %s1686_s9 = int_to_ptr.vmem [resolvable:$true] %s888_s9 }
  0x4d   : > { %1068 = vmatprep.subr.mxu0 %v444_v12  ;;  %v441_v22 = vadd.f32 %v1532_v18, %v1529_v17  ;;  %v445_v23 = vld [vmem:[%s1744_s3] sm:$0xff]  ;;  %v1551_v25 = vld [vmem:[%s1500_s21 + $0x10] sm:$0xff]  ;;  %v448_v26 = vld [vmem:[%s1745_s4 + $0x8] sm:$0xff]  ;;  %v440_v27 = vadd.f32 %v1540_v21, %v1537_v20  ;;  %s1047_s14 = sshll.u32 %s417_s19, 6  ;;  %s1044_s30 = sshll.u32 %s885_s28, 7 }
  0x4e   : > { %1069 = vmatpush3.msra.mxu0 %v444_v12  ;;  %1084 = vmatprep.mubr.msk.f32.mxu0 %vm459_vm0, %v445_v23  ;;  %v1560_v28 = vld [vmem:[%s1496_s20 + $0x8] sm:$0xff]  ;;  %v447_v30 = vld [vmem:[%s1745_s4] sm:$0xff]  ;;  %v439_v31 = vadd.f32 %v1551_v25, %v1548_v24  ;;  %v553_v35 = vld [vmem:[%s1747_s6 + $0x10] sm:$0xff]  ;;  %s420_s10 = scalar_lea.vmem %s1743_s2, %s1047_s14  ;;  %s1684_s17 = scalar_lea.hbm %s1748_s7, %s1044_s30 }
  0x4f   : > { %1070 = vmatprep.subr.mxu0 %v443_v16  ;;  %456 = vperm.xlu0 %1183, %v448_v26   ;;  %v1563_v29 = vld [vmem:[%s1500_s21 + $0x8] sm:$0xff]  ;;  %v1571_v32 = vld [vmem:[%s1496_s20] sm:$0xff]  ;;  %v557_v39 = vld [vmem:[%s1747_s6 + $0x30] sm:$0xff]  ;;  %s1243_s18 = scalar_lea.vmem %s1686_s9, 1024  ;;  %s1346_s12 = smov [#allocation6]  }
  0x50   : > { %1071 = vmatpush3.msra.mxu0 %v443_v16  ;;  %v1574_v33 = vld [vmem:[%s1500_s21] sm:$0xff]  ;;  %v438_v34 = vadd.f32 %v1563_v29, %v1560_v28  ;;  %v446_v37 = vld [vmem:[%s1744_s3 + $0x8] sm:$0xff]  ;;  %v731_v41 = vld [vmem:[%s420_s10 + $0x10] sm:$0xff]  ;;  %p1244_p8 = scmp.ne.s32.totalorder %s1686_s9, %s1243_s18  ;;  %s1247_s19 = sshll.u32 %s1346_s12, 4  ;;  %s1248_s19 = int_to_ptr.vmem [resolvable:$false] %s1247_s19 }
  0x51   : > { %1072 = vmatprep.subr.mxu0 %v442_v19  ;;  %v437_v36 = vadd.f32 %v1574_v33, %v1571_v32  ;;  %v555_v38 = vld [vmem:[%s1747_s6 + $0x20] sm:$0xff]  ;;  %v735_v43 = vld [vmem:[%s420_s10 + $0x30] sm:$0xff]  ;;  %v552_v46 = vld [vmem:[%s1747_s6 + $0x8] sm:$0xff]  ;;  %s1249_s23 = scalar_lea.vmem %s1248_s19, 2048  ;;  %p1250_p2 = scmp.lt.s32.totalorder %s1686_s9, %s1248_s19 }
  0x52   : > { %1073 = vmatpush3.msra.mxu0 %v442_v19  ;;  %v729_v40 = vld [vmem:[%s420_s10] sm:$0xff]  ;;  %v554_v47 = vld [vmem:[%s1747_s6 + $0x18] sm:$0xff]  ;;  %v556_v48 = vld [vmem:[%s1747_s6 + $0x28] sm:$0xff]  ;;  %p1245_p0 = pnand %p1244_p8, %p1454_p9  ;;  %p1251_p4 = scmp.lt.s32.totalorder %s1249_s23, %s1243_s18 }
  0x53   : > { %1074 = vmatprep.subr.mxu0 %v441_v22  ;;  %451 = vperm.xlu0 %1183, %v447_v30   ;;  %v733_v42 = vld [vmem:[%s420_s10 + $0x20] sm:$0xff]  ;;  %v558_v49 = vld [vmem:[%s1747_s6 + $0x38] sm:$0xff]  ;;  %v730_v50 = vld [vmem:[%s420_s10 + $0x8] sm:$0xff] }
  0x54   : > { %1075 = vmatpush3.msra.mxu0 %v441_v22  ;;  %v543_v44 = vld [vmem:[%s1746_s5] sm:$0xff]  ;;  %v732_v51 = vld [vmem:[%s420_s10 + $0x18] sm:$0xff]  ;;  %v734_v52 = vld [vmem:[%s420_s10 + $0x28] sm:$0xff]  ;;  %p1246_p1 = pneg %p1245_p0  ;;  %p1252_p5 = por %p1251_p4, %p1250_p2 }
  0x55   : > { %1076 = vmatprep.subr.mxu0 %v440_v27  ;;  %1091 = vmatprep.mubr.msk.f32.mxu1 %vm599_vm1, %v543_v44  ;;  %v551_v45 = vld [vmem:[%s1747_s6] sm:$0xff]  ;;  %v736_v53 = vld [vmem:[%s420_s10 + $0x38] sm:$0xff]  ;;  %v544_v62 = vld [vmem:[%s1746_s5 + $0x8] sm:$0xff]  ;;  %s874_s10 = scalar_lea.sflag [#allocation5], %s1490_s24 }
  0x56   : > { %1077 = vmatpush3.msra.mxu0 %v440_v27  ;;  %561 = vperm.xlu1 %1184, %v551_v45   ;;  %v545_v63 = vld [vmem:[%s1746_s5 + $0x10] sm:$0xff]  ;;  %v546_v0 = vld [vmem:[%s1746_s5 + $0x18] sm:$0xff]  ;;  %v547_v1 = vld [vmem:[%s1746_s5 + $0x20] sm:$0xff]  ;;  %p1253_p6 = pnand %p1252_p5, %p1246_p1 }
  0x57   : > { %1078 = vmatprep.subr.mxu0 %v439_v31  ;;  %571 = vperm.xlu0 %1183, %v553_v35   ;;  %v548_v2 = vld [vmem:[%s1746_s5 + $0x28] sm:$0xff]  ;;  %v549_v3 = vld [vmem:[%s1746_s5 + $0x30] sm:$0xff]  ;;  %v550_v4 = vld [vmem:[%s1746_s5 + $0x38] sm:$0xff] }
  0x58   : > { %1079 = vmatpush3.msra.mxu0 %v439_v31 }
  0x59   : > { %1080 = vmatprep.subr.mxu0 %v438_v34 }
  0x5a   : > { %1081 = vmatpush3.msra.mxu0 %v438_v34  ;;  %566 = vperm.xlu1 %1184, %v552_v46  }
  0x5b   : > { %1082 = vmatprep.subr.mxu0 %v437_v36  ;;  %581 = vperm.xlu0 %1183, %v555_v38  }
  0x5c   : > { %1083 = vmatpush3.msra.mxu0 %v437_v36 }
  0x5d   : > { %1085 = vmatmul.mubr.msk.f32.vlgmr.msra.gmra.mxu0 %vm459_vm0, %v446_v37 }
  0x5e   : > { %576 = vperm.xlu1 %1184, %v554_v47  }
  0x5f   : > { %591 = vperm.xlu0 %1183, %v557_v39  }
  0x62   : > { %586 = vperm.xlu1 %1184, %v556_v48  }
  0x63   : > { %739 = vperm.xlu0 %1183, %v729_v40  }
  0x66   : > { %596 = vperm.xlu1 %1184, %v558_v49  }
  0x67   : > { %749 = vperm.xlu0 %1183, %v731_v41  }
  0x6a   : > { %744 = vperm.xlu1 %1184, %v730_v50  }
  0x6b   : > { %759 = vperm.xlu0 %1183, %v733_v42  }
  0x6e   : > { %754 = vperm.xlu1 %1184, %v732_v51  }
  0x6f   : > { %769 = vperm.xlu0 %1183, %v735_v43  }
  0x72   : > { %764 = vperm.xlu1 %1184, %v734_v52  }
  0x76   : > { %774 = vperm.xlu1 %1184, %v736_v53  }
  0xca   : > { %v457_v54 = vpop.permute.xlu0 %456 }
  0xce   : > { %v452_v57 = vpop.permute.xlu0 %451 }
  0xd1   : > { %v562_v5 = vpop.permute.xlu1 %561 }
  0xd2   : > { %v572_v8 = vpop.permute.xlu0 %571 }
  0xd5   : > { %v567_v6 = vpop.permute.xlu1 %566 }
  0xd6   : > { %v582_v16 = vpop.permute.xlu0 %581 }
  0xd9   : > { %v577_v7 = vpop.permute.xlu1 %576 }
  0xda   : > { %v592_v22 = vpop.permute.xlu0 %591 }
  0xdd   : > { %v587_v12 = vpop.permute.xlu1 %586 }
  0xde   : > { %v740_v26 = vpop.permute.xlu0 %739 }
  0xe1   : > { %v597_v19 = vpop.permute.xlu1 %596 }
  0xe2   : > { %v750_v37 = vpop.permute.xlu0 %749 }
  0xe5   : > { %v745_v23 = vpop.permute.xlu1 %744 }
  0xe6   : > { %v760_v51 = vpop.permute.xlu0 %759 }
  0xe9   : > { %v755_v31 = vpop.permute.xlu1 %754 }
  0xed   : > { %v765_v46 = vpop.permute.xlu1 %764 }
 0x11d   : > { %v1086_v55 = vpop.f32.mrf.mxu0 }
 0x11e   : > { %v538_v56 = vadd.f32 %v1086_v55, %v457_v54 }
 0x11f   : > { %v532_v58 = vpop.f32.mrf.mxu0 }
 0x120   : > { %v542_v59 = vmax.f32 %v538_v56, 0.0  ;;  %v533_v60 = vadd.f32 %v532_v58, %v452_v57 }
 0x122   : > { %v541_v61 = vmax.f32 %v533_v60, 0.0  ;;  %1087 = vmatprep.subr.mxu1 %v542_v59  ;;  %v775_v60 = vpop.permute.xlu1 %774 }
 0x123   : > { %1088 = vmatpush3.msra.mxu1 %v542_v59 }
 0x124   : > { %1089 = vmatprep.subr.mxu1 %v541_v61 }
 0x125   : > { %1090 = vmatpush3.msra.mxu1 %v541_v61 }
 0x126   : > { %1092 = vmatmul.mubr.msk.f32.vlgmr.msra.gmra.mxu1 %vm599_vm1, %v544_v62 }
 0x127   : > { %1094 = vmatprep.mubr.msk.f32.mxu1 %vm599_vm1, %v545_v63 }
 0x12a   : > { %1095 = vmatmul.mubr.msk.f32.gmra.mxu1 %vm599_vm1, %v546_v0 }
 0x12b   : > { %1097 = vmatprep.mubr.msk.f32.mxu1 %vm599_vm1, %v547_v1  ;;  %v770_v1 = vpop.permute.xlu0 %769 }
 0x12e   : > { %1098 = vmatmul.mubr.msk.f32.gmra.mxu1 %vm599_vm1, %v548_v2 }
 0x12f   : > { %1100 = vmatprep.mubr.msk.f32.mxu1 %vm599_vm1, %v549_v3 }
 0x132   : > { %1101 = vmatmul.mubr.msk.f32.gmra.mxu1 %vm599_vm1, %v550_v4 }
 0x1e6   : > { %v1093_v27 = vpop.f32.mrf.mxu1 }
 0x1e7   : > { %v696_v30 = vadd.f32 %v1093_v27, %v567_v6 }
 0x1e8   : > { %v690_v34 = vpop.f32.mrf.mxu1 }
 0x1e9   : > { %v778_v35 = vadd.f32 %v745_v23, %v696_v30  ;;  %v691_v36 = vadd.f32 %v690_v34, %v562_v5  ;;  %v834_v34 = vsub.f32 %v1560_v28, %v1563_v29 }
 0x1ea   : > { %v1096_v38 = vpop.f32.mrf.mxu1 }
 0x1eb   : > { %v1035_v39 = vmul.f32 -1.442695, %v778_v35  ;;  %v777_v40 = vadd.f32 %v740_v26, %v691_v36  ;;  %v706_v41 = vadd.f32 %v1096_v38, %v577_v7 }
 0x1ec   : > { %v700_v42 = vpop.f32.mrf.mxu1 }
 0x1ed   : > { %1185 = vpow2.f32 %v1035_v39  ;;  %v1034_v43 = vmul.f32 -1.442695, %v777_v40  ;;  %v780_v44 = vadd.f32 %v755_v31, %v706_v41  ;;  %v701_v45 = vadd.f32 %v700_v42, %v572_v8 }
 0x1ee   : > { %v1099_v47 = vpop.f32.mrf.mxu1  ;;  %v836_v40 = vsub.f32 %v1537_v20, %v1540_v21  ;;  %v837_v20 = vsub.f32 %v1529_v17, %v1532_v18 }
 0x1ef   : > { %1187 = vpow2.f32 %v1034_v43  ;;  %v1037_v48 = vmul.f32 -1.442695, %v780_v44  ;;  %v779_v49 = vadd.f32 %v750_v37, %v701_v45  ;;  %v716_v50 = vadd.f32 %v1099_v47, %v587_v12 }
 0x1f0   : > { %v710_v52 = vpop.f32.mrf.mxu1  ;;  %v833_v37 = vsub.f32 %v1571_v32, %v1574_v33  ;;  %v835_v43 = vsub.f32 %v1548_v24, %v1551_v25  ;;  %v838_v32 = vsub.f32 %v1521_v14, %v1524_v15 }
 0x1f1   : > { %1189 = vpow2.f32 %v1037_v48  ;;  %v1036_v53 = vmul.f32 -1.442695, %v779_v49  ;;  %v782_v54 = vadd.f32 %v765_v46, %v716_v50  ;;  %v711_v55 = vadd.f32 %v710_v52, %v582_v16 }
 0x1f2   : > { %v1102_v56 = vpop.f32.mrf.mxu1 }
 0x1f3   : > { %1191 = vpow2.f32 %v1036_v53  ;;  %v1039_v57 = vmul.f32 -1.442695, %v782_v54  ;;  %v781_v58 = vadd.f32 %v760_v51, %v711_v55  ;;  %v726_v59 = vadd.f32 %v1102_v56, %v597_v19 }
 0x1f4   : > { %v720_v61 = vpop.f32.mrf.mxu1  ;;  %v839_v54 = vsub.f32 %v1513_v11, %v1518_v13 }
 0x1f5   : > { %1193 = vpow2.f32 %v1039_v57  ;;  %v1038_v62 = vmul.f32 -1.442695, %v781_v58  ;;  %v784_v63 = vadd.f32 %v775_v60, %v726_v59  ;;  %v721_v0 = vadd.f32 %v720_v61, %v592_v22 }
 0x1f7   : > { %1195 = vpow2.f32 %v1038_v62  ;;  %v1041_v2 = vmul.f32 -1.442695, %v784_v63  ;;  %v783_v3 = vadd.f32 %v770_v1, %v721_v0 }
 0x1f9   : > { %1197 = vpow2.f32 %v1041_v2  ;;  %v1040_v4 = vmul.f32 -1.442695, %v783_v3 }
 0x1fa   : > { %v1186_v5 = vpop.eup %1185 }
 0x1fb   : > { %v810_v6 = vadd.f32 1.0, %v1186_v5  ;;  %1199 = vpow2.f32 %v1040_v4 }
 0x1fc   : > { %v1188_v7 = vpop.eup %1187 }
 0x1fd   : > { %1201 = vrcp.f32 %v810_v6  ;;  %v809_v8 = vadd.f32 1.0, %v1188_v7 }
 0x1fe   : > { %v1190_v12 = vpop.eup %1189 }
 0x1ff   : > { %1203 = vrcp.f32 %v809_v8  ;;  %v812_v16 = vadd.f32 1.0, %v1190_v12 }
 0x200   : > { %v1192_v19 = vpop.eup %1191 }
 0x201   : > { %1205 = vrcp.f32 %v812_v16  ;;  %v811_v23 = vadd.f32 1.0, %v1192_v19 }
 0x202   : > { %v1194_v26 = vpop.eup %1193 }
 0x203   : > { %1207 = vrcp.f32 %v811_v23  ;;  %v814_v22 = vadd.f32 1.0, %v1194_v26 }
 0x204   : > { %v1196_v27 = vpop.eup %1195 }
 0x205   : > { %1209 = vrcp.f32 %v814_v22  ;;  %v813_v30 = vadd.f32 1.0, %v1196_v27 }
 0x206   : > { %v1198_v31 = vpop.eup %1197 }
 0x207   : > { %1211 = vrcp.f32 %v813_v30  ;;  %v816_v35 = vadd.f32 1.0, %v1198_v31 }
 0x208   : > { %v1200_v36 = vpop.eup %1199 }
 0x209   : > { %1213 = vrcp.f32 %v816_v35  ;;  %v815_v38 = vadd.f32 1.0, %v1200_v36 }
 0x20a   : > { %v1202_v39 = vpop.eup %1201 }
 0x20b   : > { %v842_v41 = vmul.f32 %v1202_v39, %v834_v34  ;;  %1215 = vrcp.f32 %v815_v38 }
 0x20c   : > { %v1204_v42 = vpop.eup %1203 }
 0x20d   : > { %v850_v28 = vadd.f32 %v842_v41, %v1563_v29  ;;  %v841_v44 = vmul.f32 %v1204_v42, %v833_v37 }
 0x20e   : > { %v1206_v45 = vpop.eup %1205 }
 0x20f   : > { %v858_v46 = vmul.f32 2.0, %v850_v28  ;;  %v849_v47 = vadd.f32 %v841_v44, %v1574_v33  ;;  %v844_v48 = vmul.f32 %v1206_v45, %v836_v40  ;;  %v840_v33 = vsub.f32 %v1507_v9, %v1510_v10 }
 0x210   : > { %v1208_v49 = vpop.eup %1207 }
 0x211   : > { %866 = vst [vmem:[%s1660_s15 + $0x8] sm:$0xff] %v858_v46  ;;  %v857_v24 = vmul.f32 2.0, %v849_v47  ;;  %v852_v29 = vadd.f32 %v844_v48, %v1540_v21  ;;  %v843_v50 = vmul.f32 %v1208_v49, %v835_v43 }
 0x212   : > { %v1210_v14 = vpop.eup %1209 }
 0x213   : > { %865 = vst [vmem:[%s1660_s15] sm:$0xff] %v857_v24  ;;  %v860_v51 = vmul.f32 2.0, %v852_v29  ;;  %v851_v17 = vadd.f32 %v843_v50, %v1551_v25  ;;  %v846_v52 = vmul.f32 %v1210_v14, %v838_v32 }
 0x214   : > { %v1212_v53 = vpop.eup %1211 }
 0x215   : > { %868 = vst [vmem:[%s1660_s15 + $0x18] sm:$0xff] %v860_v51  ;;  %v859_v21 = vmul.f32 2.0, %v851_v17  ;;  %v854_v55 = vadd.f32 %v846_v52, %v1524_v15  ;;  %v845_v56 = vmul.f32 %v1212_v53, %v837_v20 }
 0x216   : > { %v1214_v57 = vpop.eup %1213 }
 0x217   : > { %867 = vst [vmem:[%s1660_s15 + $0x10] sm:$0xff] %v859_v21  ;;  %v862_v9 = vmul.f32 2.0, %v854_v55  ;;  %v853_v25 = vadd.f32 %v845_v56, %v1532_v18  ;;  %v848_v58 = vmul.f32 %v1214_v57, %v840_v33 }
 0x218   : > { %v1216_v59 = vpop.eup %1215 }
 0x219   : > { %870 = vst [vmem:[%s1660_s15 + $0x28] sm:$0xff] %v862_v9  ;;  %v861_v11 = vmul.f32 2.0, %v853_v25  ;;  %v856_v60 = vadd.f32 %v848_v58, %v1510_v10  ;;  %v847_v61 = vmul.f32 %v1216_v59, %v839_v54 }
 0x21b   : > { %869 = vst [vmem:[%s1660_s15 + $0x20] sm:$0xff] %v861_v11  ;;  %v864_v15 = vmul.f32 2.0, %v856_v60  ;;  %v855_v62 = vadd.f32 %v847_v61, %v1518_v13 }
 0x21d   : > { %872 = vst [vmem:[%s1660_s15 + $0x38] sm:$0xff] %v864_v15  ;;  %v863_v18 = vmul.f32 2.0, %v855_v62 }
 0x21f   : > { %871 = vst [vmem:[%s1660_s15 + $0x30] sm:$0xff] %v863_v18 }
 0x220   : > { %1256 = shalt.err (!%p1253_p6)
}
 0x221   : > { %s1257_s0 = scalar_lea.hbm %s1684_s17, 1024  ;;  %s1261_s14 = scalar_lea.hbm %s1748_s7, 4096 }
 0x222   : > { %p1258_p7 = scmp.ne.s32.totalorder %s1684_s17, %s1257_s0  ;;  %p1262_p13 = scmp.lt.s32.totalorder %s1684_s17, %s1748_s7 }
 0x223   : > { %p1263_p3 = scmp.lt.s32.totalorder %s1261_s14, %s1257_s0 }
 0x224   : > { %p1259_p10 = pnand %p1258_p7, %p1454_p9 }
 0x225   : > { %p1264_p8 = por %p1263_p3, %p1262_p13 }
 0x226   : > { %p1260_p11 = pneg %p1259_p10 }
 0x228   : > { %p1265_p0 = pnand %p1264_p8, %p1260_p11 }
 0x22a   : > { %1268 = shalt.err (!%p1265_p0)
}
 0x22b   : > { %s1347_s22 = smov 128   ;;  %s1348_s28 = smov 256  }
 0x22c   : > { %s1349_s30 = smov 8  }
 0x22d   : > { %1105 = dma.vmem_to_hbm [thread:$0]  (%p1454_p9), %s1686_s9, 1024, %s1684_s17, %s874_s10, %s1347_s22, %s1348_s28, %s1349_s30  }
 0x22e PF: > { %s1766_s27 = sld [smem:[#allocation9_spill]]  ;;  %p1111_p1 = scmp.ge.s32.totalorder %s1339_s8, 2 }
 0x230   : > { %p1108_p2 = pnand %p1111_p1, %p1461_p12 }
 0x232   : > { %p1109_p4 = pneg %p1108_p2 }
 0x234   : > { %s903_s18 = sand.u32 1, %s1766_s27  }
 0x235   : > { %s904_s12 = scalar_lea.sflag [#allocation5], %s903_s18 }
 0x236   : > { %1306 = dma.done.wait (%p1109_p4), %s904_s12, 1024  }
 0x237   : > { %1308 = vsyncadd (%p1109_p4), %s904_s12, 4294966272  ;;  %s23_s8 = sadd.s32 1, %s1339_s8   ;;  %s1768_s16 = sld [smem:[#allocation14_spill]] }
 0x238   : > { %p20_p5 = scmp.ge.s32.totalorder %s23_s8, 6   ;;  %s1769_s28 = sld [smem:[#allocation10_spill]] }
 0x239   : > { %s1770_s9 = sld [smem:[#allocation11_spill]]  ;;  %s1772_s24 = smov %s1315_s25 }
 0x23a   : > { %s1771_s30 = sld [smem:[#allocation12_spill]]  ;;  %s1773_s25 = smov %s1319_s26 }
 0x23b   : > { %s1775_s27 = smov %s1331_s29  ;;  %22 = sbr.rel (!%p20_p5) target bundleno = 9 (0x9), region = 142 }
 0x23d   : > { %s1774_s26 = smov %s1768_s16 }
 0x23f   : > { %s1776_s29 = smov %s1770_s9 }
 0x240   :  { %909 = vsyncpa [#allocation4], 1 }
 0x241   :  { %911 = vsyncpa [#allocation4 + $0x1], 1 }
 0x242   :  { %912 = vsyncpa [#allocation5], 1 }
 0x243   :  { %914 = vsyncpa [#allocation5 + $0x1], 1 }

</bundles_post_ra>
